<compile_context>
chip_gen: v7x
topology: tpu7x:2x2x1
jax: 0.10.0
libtpu: 0.0.40
codegen_flags: <defaults>
</compile_context>

<pallas_src>
import functools

import jax
import jax.numpy as jnp
from jax import lax
from jax.experimental import pallas as pl
from jax.experimental.pallas import tpu as pltpu


# -----------------------------------------------------------------------------
# Fused kernel: conv matmul + bias + adaptive pool + activation
# -----------------------------------------------------------------------------
def _fused_conv_pool_act_kernel(patch_ref, w_ref, b_ref, o_ref, *, win, p2,
                                pool_type, activation):
    # patch_ref: (1, K3C, WIN*P2) bf16  im2col'ed input; columns = (win, out_pixel)
    # w_ref:     (Cout, K3C)      bf16  reshaped + transposed conv weight
    # b_ref:     (Cout, 1)        f32   bias
    # o_ref:     (1, Cout, P2)          pooled + activated output (already NC(DHW))
    conv = jnp.dot(w_ref[...], patch_ref[0],
                   preferred_element_type=jnp.float32)       # (Cout, WIN*P2) on MXU
    conv = conv + b_ref[...]                                  # lane-broadcast bias

    # Adaptive pooling over the window axis: static lane slices, elementwise VPU ops.
    pooled = conv[:, 0:p2]
    if pool_type == "max":
        for k in range(1, win):
            pooled = jnp.maximum(pooled, conv[:, k * p2:(k + 1) * p2])
    else:  # 'avg'
        for k in range(1, win):
            pooled = pooled + conv[:, k * p2:(k + 1) * p2]
        pooled = pooled * (1.0 / win)

    if activation == "relu":
        pooled = jnp.maximum(pooled, 0.0)
    elif activation == "gelu":
        pooled = jax.nn.gelu(pooled)
    elif activation == "swish":
        pooled = pooled * jax.nn.sigmoid(pooled)
    # activation None -> identity. Dropout(p=0) -> identity in forward.
    o_ref[0] = pooled.astype(o_ref.dtype)


# -----------------------------------------------------------------------------
# ConvBlock3D forward (inference)
# -----------------------------------------------------------------------------
def conv_block_3d(x_ncdhw, w, b, *, padding, output_size, activation, pool_type):
    # TODO(synk): training-mode dropout (p>0) via pltpu.prng_* not implemented.
    N, Cin, D, H, W = x_ncdhw.shape
    KD, KH, KW, _, Cout = w.shape
    OD, OH, OW = output_size

    # ---- layout glue in plain JAX (tiny tensors) -----------------------------
    x = jnp.transpose(x_ncdhw, (0, 2, 3, 4, 1))               # NCDHW -> NDHWC
    # NOTE: jnp.pad costs one extra HBM copy of x; negligible at this size (~8 KB).
    xp = jnp.pad(x, ((0, 0), (padding, padding), (padding, padding),
                     (padding, padding), (0, 0)))
    Do = D + 2 * padding - KD + 1        # stride = 1
    Ho = H + 2 * padding - KH + 1
    Wo = W + 2 * padding - KW + 1
    assert Do % OD == 0 and Ho % OH == 0 and Wo % OW == 0, \
        "evenly-divisible adaptive pooling only"
    sd, sh, sw = Do // OD, Ho // OH, Wo // OW
    WIN, P2 = sd * sh * sw, OD * OH * OW
    K3C = KD * KH * KW * Cin

    # im2col: one K3C-deep column per conv-output pixel. Column order is
    # (pool-window major, pooled-output-pixel minor) so pooling in the kernel is a
    # static-slice max; contraction order (kd, kh, kw, cin) matches the weight.
    taps = jnp.stack(
        [xp[:, kd:kd + Do, kh:kh + Ho, kw:kw + Wo, :]
         for kd in range(KD) for kh in range(KH) for kw in range(KW)],
        axis=4)                                               # (N, Do, Ho, Wo, K3, Cin)
    taps = taps.reshape(N, OD, sd, OH, sh, OW, sw, K3C)
    taps = taps.transpose(0, 7, 2, 4, 6, 1, 3, 5)             # (N, K3C, sd,sh,sw, OD,OH,OW)
    patches = taps.reshape(N, K3C, WIN * P2).astype(jnp.bfloat16)

    w_t = w.reshape(K3C, Cout).T.astype(jnp.bfloat16)         # (Cout, K3C)
    b2 = b.reshape(Cout, 1).astype(jnp.float32)

    kernel = functools.partial(_fused_conv_pool_act_kernel, win=WIN, p2=P2,
                               pool_type=pool_type, activation=activation)
    # TODO(synk): for large D/H/W/channels, tile the WIN*P2 (lane) axis with a second
    # grid dim instead of whole-volume blocks and set vmem_limit_bytes explicitly
    # (v7x has only 64 MiB physical VMEM).
    out = pl.pallas_call(
        kernel,
        out_shape=jax.ShapeDtypeStruct((N, Cout, P2), x_ncdhw.dtype),
        grid=(N,),
        in_specs=[
            pl.BlockSpec((1, K3C, WIN * P2), lambda n: (n, 0, 0)),   # patches
            pl.BlockSpec((Cout, K3C), lambda n: (0, 0)),             # weight
            pl.BlockSpec((Cout, 1), lambda n: (0, 0)),               # bias
        ],
        out_specs=pl.BlockSpec((1, Cout, P2), lambda n: (n, 0, 0)),
        compiler_params=pltpu.CompilerParams(
            dimension_semantics=("parallel",)),                      # v7x: 2 TCs
    )(patches, w_t, b2)

    # (N, Cout, OD*OH*OW) is already NCDHW order -> free reshape, no transpose.
    return out.reshape(N, Cout, OD, OH, OW)


# -----------------------------------------------------------------------------
# Main
# -----------------------------------------------------------------------------
if __name__ == "__main__":
    # Module config: ConvBlock3D(in_channels=4, out_channels=8, kernel_size=3,
    #                            stride=1, padding=1, output_size=(4,4,4),
    #                            activation='relu', dropout=0, pool_type='max')
    N, CIN, D, H, W = 2, 4, 8, 8, 8
    COUT, K, PAD = 8, 3, 1
    OUTPUT_SIZE = (4, 4, 4)
    ACT, POOL = "relu", "max"

    key = jax.random.PRNGKey(0)
    kx, kw, kb = jax.random.split(key, 3)
    x_ncdhw = jax.random.normal(kx, (N, CIN, D, H, W), dtype=jnp.float32)
    fan_in = CIN * K * K * K
    w = jax.random.normal(kw, (K, K, K, CIN, COUT), dtype=jnp.float32) / jnp.sqrt(
        jnp.float32(fan_in)
    )
    b = 0.1 * jax.random.normal(kb, (COUT,), dtype=jnp.float32)

    out = conv_block_3d(
        x_ncdhw, w, b, padding=PAD, output_size=OUTPUT_SIZE, activation=ACT,
        pool_type=POOL,
    )
    out = jax.block_until_ready(out)

    # Reference (plain JAX, f32): conv3d -> adaptive max pool -> relu
    x_ndhwc = jnp.transpose(x_ncdhw, (0, 2, 3, 4, 1))
    ref = lax.conv_general_dilated(
        x_ndhwc, w, window_strides=(1, 1, 1), padding=[(PAD, PAD)] * 3,
        dimension_numbers=("NDHWC", "DHWIO", "NDHWC"),
    ) + b
    OD, OH, OW = OUTPUT_SIZE
    sd, sh, sw = D // OD, H // OH, W // OW
    ref = ref.reshape(N, OD, sd, OH, sh, OW, sw, COUT).max(axis=(2, 4, 6))
    ref = jnp.maximum(ref, 0.0)
    ref = jnp.transpose(ref, (0, 4, 1, 2, 3))  # -> NCDHW

    assert out.shape == (N, COUT, OD, OH, OW), out.shape
    # bf16 MXU inputs with f32 accumulation -> small tolerance vs. f32 reference.
    assert jnp.allclose(out, ref, rtol=2e-2, atol=2e-2), float(
        jnp.max(jnp.abs(out - ref))
    )
    print("KERNEL_OK")
</pallas_src>

<mosaic_0001>
module attributes {stable_mosaic.version = 11 : i64} {
  func.func @_fused_conv_pool_act_kernel(%arg0: i32, %arg1: memref<1x108x512xbf16, #tpu.memory_space<vmem>>, %arg2: memref<8x108xbf16, #tpu.memory_space<vmem>>, %arg3: memref<8x1xf32, #tpu.memory_space<vmem>>, %arg4: memref<1x8x64xf32, #tpu.memory_space<vmem>>) attributes {dimension_semantics = [#tpu.dimension_semantics<parallel>], iteration_bounds = array<i64: 2>, scalar_prefetch = 0 : i64, scratch_operands = 0 : i64, tpu.core_type = #tpu.core_type<tc>, window_params = [{transform_indices = @transform_0, window_bounds = array<i64: 1, 108, 512>}, {pipeline_mode = #tpu.pipeline_mode<synchronous>, transform_indices = @transform_1, window_bounds = array<i64: 8, 108>}, {pipeline_mode = #tpu.pipeline_mode<synchronous>, transform_indices = @transform_2, window_bounds = array<i64: 8, 1>}, {transform_indices = @transform_3, window_bounds = array<i64: 1, 8, 64>}]} {
    %c0 = arith.constant 0 : index
    %c0_0 = arith.constant 0 : index
    %0 = vector.load %arg2[%c0, %c0_0] : memref<8x108xbf16, #tpu.memory_space<vmem>>, vector<8x108xbf16>
    %c0_1 = arith.constant 0 : index
    %c0_2 = arith.constant 0 : index
    %c0_3 = arith.constant 0 : index
    %1 = vector.load %arg1[%c0_1, %c0_2, %c0_3] : memref<1x108x512xbf16, #tpu.memory_space<vmem>>, vector<1x108x512xbf16>
    %2 = vector.shape_cast %1 : vector<1x108x512xbf16> to vector<108x512xbf16>
    %cst = arith.constant dense<0.000000e+00> : vector<8x512xf32>
    %3 = tpu.matmul %0, %2, %cst {dimension_numbers = #tpu.dot_dimension_numbers<[1], [0], [0], [1], [0, 0, 1, 1], [], []>} : vector<8x108xbf16>, vector<108x512xbf16>, vector<8x512xf32> -> vector<8x512xf32>
    %c0_4 = arith.constant 0 : index
    %c0_5 = arith.constant 0 : index
    %4 = vector.load %arg3[%c0_4, %c0_5] : memref<8x1xf32, #tpu.memory_space<vmem>>, vector<8x1xf32>
    %5 = vector.broadcast %4 : vector<8x1xf32> to vector<8x512xf32>
    %6 = arith.addf %3, %5 : vector<8x512xf32>
    %7 = vector.extract_strided_slice %6 {offsets = [0, 0], sizes = [8, 64], strides = [1, 1]} : vector<8x512xf32> to vector<8x64xf32>
    %8 = vector.extract_strided_slice %6 {offsets = [0, 64], sizes = [8, 64], strides = [1, 1]} : vector<8x512xf32> to vector<8x64xf32>
    %9 = arith.maximumf %7, %8 : vector<8x64xf32>
    %10 = vector.extract_strided_slice %6 {offsets = [0, 128], sizes = [8, 64], strides = [1, 1]} : vector<8x512xf32> to vector<8x64xf32>
    %11 = arith.maximumf %9, %10 : vector<8x64xf32>
    %12 = vector.extract_strided_slice %6 {offsets = [0, 192], sizes = [8, 64], strides = [1, 1]} : vector<8x512xf32> to vector<8x64xf32>
    %13 = arith.maximumf %11, %12 : vector<8x64xf32>
    %14 = vector.extract_strided_slice %6 {offsets = [0, 256], sizes = [8, 64], strides = [1, 1]} : vector<8x512xf32> to vector<8x64xf32>
    %15 = arith.maximumf %13, %14 : vector<8x64xf32>
    %16 = vector.extract_strided_slice %6 {offsets = [0, 320], sizes = [8, 64], strides = [1, 1]} : vector<8x512xf32> to vector<8x64xf32>
    %17 = arith.maximumf %15, %16 : vector<8x64xf32>
    %18 = vector.extract_strided_slice %6 {offsets = [0, 384], sizes = [8, 64], strides = [1, 1]} : vector<8x512xf32> to vector<8x64xf32>
    %19 = arith.maximumf %17, %18 : vector<8x64xf32>
    %20 = vector.extract_strided_slice %6 {offsets = [0, 448], sizes = [8, 64], strides = [1, 1]} : vector<8x512xf32> to vector<8x64xf32>
    %21 = arith.maximumf %19, %20 : vector<8x64xf32>
    %cst_6 = arith.constant 0.000000e+00 : f32
    %22 = vector.broadcast %cst_6 : f32 to vector<8x64xf32>
    %23 = arith.maximumf %21, %22 : vector<8x64xf32>
    %c0_7 = arith.constant 0 : index
    %c0_8 = arith.constant 0 : index
    %c0_9 = arith.constant 0 : index
    %24 = vector.load %arg4[%c0_7, %c0_8, %c0_9] : memref<1x8x64xf32, #tpu.memory_space<vmem>>, vector<1x8x64xf32>
    %25 = vector.shape_cast %24 : vector<1x8x64xf32> to vector<8x64xf32>
    %26 = vector.shape_cast %23 : vector<8x64xf32> to vector<1x8x64xf32>
    tpu.vector_store %arg4[%c0_7, %c0_8, %c0_9], %26 {strides = array<i32>} : memref<1x8x64xf32, #tpu.memory_space<vmem>>, vector<1x8x64xf32>,
    return
  }
  func.func @transform_0(%arg0: i32) -> (i32, i32, i32) {
    %c0_i32 = arith.constant 0 : i32
    %c0_i32_0 = arith.constant 0 : i32
    %c0_i32_1 = arith.constant 0 : i32
    return %arg0, %c0_i32, %c0_i32_0 : i32, i32, i32
  }
  func.func @transform_1(%arg0: i32) -> (i32, i32) {
    %c0_i32 = arith.constant 0 : i32
    %c0_i32_0 = arith.constant 0 : i32
    %c0_i32_1 = arith.constant 0 : i32
    return %c0_i32, %c0_i32_0 : i32, i32
  }
  func.func @transform_2(%arg0: i32) -> (i32, i32) {
    %c0_i32 = arith.constant 0 : i32
    %c0_i32_0 = arith.constant 0 : i32
    %c0_i32_1 = arith.constant 0 : i32
    return %c0_i32, %c0_i32_0 : i32, i32
  }
  func.func @transform_3(%arg0: i32) -> (i32, i32, i32) {
    %c0_i32 = arith.constant 0 : i32
    %c0_i32_0 = arith.constant 0 : i32
    %c0_i32_1 = arith.constant 0 : i32
    return %arg0, %c0_i32, %c0_i32_0 : i32, i32, i32
  }
}

</mosaic_0001>

<bundles_post_ra>
// kernel: tpu_custom_call.1
= control target key start
LH: loop header
LB: loop body
LE: loop exit
PB: predicated region body
PF: predicated region fallthrough
CT: control target
= control target key end

     0   :  { %8 = vsyncpa [#allocation3], 0  ;;  %s889_s0 = inlined_call_operand.vmem [shape: bf16[2,108,512], index: 0, kind: input, shape index: {}]   ;;  %s890_s1 = inlined_call_operand.vmem [shape: bf16[8,108], index: 1, kind: input, shape index: {}]   ;;  %s891_s2 = inlined_call_operand.vmem [shape: f32[8,1], index: 2, kind: input, shape index: {}]   ;;  %s892_s3 = inlined_call_operand.hbm [shape: f32[2,8,64], index: 3, kind: output, shape index: {}]  }
   0x1   :  { %10 = vsyncpa [#allocation3 + $0x1], 0  ;;  %s753_s12 = smov 0   ;;  %s755_s13 = smov 0  }
   0x2   :  { %s757_s14 = smov 0   ;;  %s759_s15 = smov 0  }
   0x3 LB: > { %s774_s16 = sadd.s32 4294967295, %s728_s15   ;;  %s539_s17 = sadd.s32 4294967294, %s728_s15   ;;  %s728_s15 = sphi %s759_s15, %s898_s15   ;;  %s724_s14 = sphi %s757_s14, %s897_s14   ;;  %s720_s13 = sphi %s755_s13, %s896_s13   ;;  %s716_s12 = sphi %s753_s12, %s895_s12  }
   0x4   : > { %s778_s18 = sadd.s32 1, %s728_s15   ;;  %s91_s19 = sadd.s32 1, %s724_s14 }
   0x5   : > { %s88_s20 = ssub.s32 %s728_s15, %s778_s18  ;;  %p101_p0 = scmp.ne.s32.totalorder %s724_s14, %s720_s13 }
   0x6   : > { %p89_p1 = scmp.eq.s32.totalorder %s88_s20, 0  ;;  %p102_p2 = scmp.eq.s32.totalorder %s774_s16, 1 }
   0x7   : > { %p107_p3 = scmp.ne.s32.totalorder %s720_s13, %s716_s12  ;;  %p108_p4 = scmp.eq.s32.totalorder %s539_s17, 1 }
   0x8   : > { %s789_s21 = scalar_select %p89_p1, %s724_s14, %s91_s19  }
   0x9   : > { %p791_p5 = por %p102_p2, %p101_p0  ;;  %p795_p6 = por %p108_p4, %p107_p3 }
   0xa   : > { %p542_p7 = scmp.ge.s32.totalorder %s728_s15, 1  ;;  %p140_p8 = scmp.lt.s32.totalorder %s728_s15, 3 }
   0xc   : > { %p141_p9 = pnand %p542_p7, %p140_p8 }
   0xd   : > { %p164_p10 = scmp.lt.s32.totalorder (!%p141_p9), %s774_s16, 1  ;;  %v730_v0 = vmov (!%p141_p9), 0   ;;  %v199_v1 = vld [vmem:[%s891_s2] sm:$0xff] (!%p141_p9)  ;;  %vm345_vm0 = vcmask (!%p141_p9), 1045504   ;;  %vm341_vm1 = vcmask (!%p141_p9), 883712   ;;  %s731_s6 = smov (!%p141_p9), 64  }
   0xe   : > { %144 = sbr.rel (%p141_p9) target bundleno = 414 (0x19e), region = 32  ;;  %390 = vmatprep.mubr.bf16.mxu0 (!%p141_p9), %v730_v0  ;;  %431 = vmatprep.mubr.bf16.mxu1 (!%p141_p9), %v730_v0  ;;  %v170_v32 = vld [vmem:[%s890_s1] sm:$0xf] (!%p141_p9)  ;;  %s161_s7 = sand.u32 (!%p141_p9), 1, %s720_s13   ;;  %vm464_vm2 = vcmask (!%p141_p9), 523264  }
   0xf   : > { %623 = vset.pattern.permute.xlu0 (!%p141_p9), %v730_v0  ;;  %s543_s8 = sshll.u32 (!%p141_p9), %s161_s7, 3  ;;  %s578_s9 = sshll.u32 (!%p141_p9), %s774_s16, 7 }
  0x10   : > { %202 = vperm.xlu0 (!%p141_p9), %623, %v199_v1   ;;  %s163_s10 = scalar_lea.vmem (!%p141_p9), [#allocation2], %s543_s8  ;;  %s847_s20 = scalar_lea.hbm (!%p141_p9), %s892_s3, %s578_s9 }
  0x11   : > { %s480_s11 = sshll.u32 (!%p141_p9), %s163_s10, 4  ;;  %s467_s24 = scalar_lea.sflag (!%p141_p9), [#allocation3], %s161_s7  ;;  %s849_s11 = int_to_ptr.vmem [resolvable:$true] %s480_s11 }
  0x12   : > { %s666_s25 = scalar_lea.vmem (!%p141_p9), %s849_s11, 128 }
  0x13   : > { %p667_p11 = scmp.ne.s32.totalorder (!%p141_p9), %s849_s11, %s666_s25 }
  0x15   : > { %s165_s26 = scalar_select %p164_p10, %s774_s16, 1 }
  0x16   : > { %p668_p12 = pnand %p667_p11, %p791_p5  ;;  %s732_s16 = smov [#allocation2]  }
  0x17   : > { %s581_s27 = smul.u32 224, %s165_s26  ;;  %s670_s26 = sshll.u32 %s732_s16, 4  ;;  %s671_s26 = int_to_ptr.vmem [resolvable:$false] %s670_s26 }
  0x18   : > { %p669_p13 = pneg %p668_p12  ;;  %p673_p0 = scmp.lt.s32.totalorder %s849_s11, %s671_s26 }
  0x19   : > { %s809_s30 = scalar_lea.vmem %s889_s0, %s581_s27  ;;  %s672_s27 = scalar_lea.vmem %s671_s26, 256 }
  0x1a   : > { %v624_v2 = vld [vmem:[%s809_s30 + $0x4] ss:$16 sps:$4 sm:$0xff]   ;;  %v626_v3 = vld [vmem:[%s809_s30 + $0xc] ss:$16 sps:$4 sm:$0xff]   ;;  %v628_v4 = vld [vmem:[%s809_s30] ss:$16 sps:$4 sm:$0xff]   ;;  %p674_p1 = scmp.lt.s32.totalorder %s672_s27, %s666_s25 }
  0x1b   : > { %358 = vmatprep.subr.bf16.mxu0 %v624_v2  ;;  %v629_v5 = vld [vmem:[%s809_s30 + $0x8] ss:$16 sps:$4 sm:$0xff]   ;;  %399 = vmatprep.subr.bf16.mxu1 %v626_v3  ;;  %v630_v6 = vld [vmem:[%s809_s30 + $0x24] ss:$16 sps:$4 sm:$0xff]   ;;  %v632_v7 = vld [vmem:[%s809_s30 + $0x2c] ss:$16 sps:$4 sm:$0xff]  }
  0x1c   : > { %359 = vmatpush1.bf16.msra.mxu0 %v628_v4  ;;  %400 = vmatpush1.bf16.msra.mxu1 %v629_v5  ;;  %v634_v8 = vld [vmem:[%s809_s30 + $0x20] ss:$16 sps:$4 sm:$0xff]   ;;  %v635_v9 = vld [vmem:[%s809_s30 + $0x28] ss:$16 sps:$4 sm:$0xff]   ;;  %v636_v10 = vld [vmem:[%s809_s30 + $0x44] ss:$16 sps:$4 sm:$0xff]   ;;  %p675_p2 = por %p674_p1, %p673_p0 }
  0x1d   : > { %360 = vmatprep.subr.bf16.mxu0 %v630_v6  ;;  %401 = vmatprep.subr.bf16.mxu1 %v632_v7  ;;  %v638_v11 = vld [vmem:[%s809_s30 + $0x4c] ss:$16 sps:$4 sm:$0xff]   ;;  %v640_v12 = vld [vmem:[%s809_s30 + $0x40] ss:$16 sps:$4 sm:$0xff]   ;;  %v641_v13 = vld [vmem:[%s809_s30 + $0x48] ss:$16 sps:$4 sm:$0xff]  }
  0x1e   : > { %v642_v14 = vld [vmem:[%s809_s30 + $0x64] ss:$16 sps:$4 sm:$0xff]   ;;  %v644_v15 = vld [vmem:[%s809_s30 + $0x6c] ss:$16 sps:$4 sm:$0xff]   ;;  %v646_v16 = vld [vmem:[%s809_s30 + $0x60] ss:$16 sps:$4 sm:$0xff]   ;;  %p676_p3 = pnand %p675_p2, %p669_p13 }
  0x1f   : > { %v647_v17 = vld [vmem:[%s809_s30 + $0x68] ss:$16 sps:$4 sm:$0xff]   ;;  %v648_v18 = vld [vmem:[%s809_s30 + $0x84] ss:$16 sps:$4 sm:$0xff]   ;;  %v650_v19 = vld [vmem:[%s809_s30 + $0x8c] ss:$16 sps:$4 sm:$0xff]  }
  0x20   : > { %361 = vmatpush1.bf16.msra.mxu0 %v634_v8  ;;  %402 = vmatpush1.bf16.msra.mxu1 %v635_v9  ;;  %v652_v20 = vld [vmem:[%s809_s30 + $0x80] ss:$16 sps:$4 sm:$0xff]   ;;  %v653_v21 = vld [vmem:[%s809_s30 + $0x88] ss:$16 sps:$4 sm:$0xff]   ;;  %v654_v22 = vld [vmem:[%s809_s30 + $0xa4] ss:$16 sps:$4 sm:$0xff]  }
  0x21   : > { %362 = vmatprep.subr.bf16.mxu0 %v636_v10  ;;  %403 = vmatprep.subr.bf16.mxu1 %v638_v11  ;;  %v656_v23 = vld [vmem:[%s809_s30 + $0xac] ss:$16 sps:$4 sm:$0xff]   ;;  %v658_v24 = vld [vmem:[%s809_s30 + $0xa0] ss:$16 sps:$4 sm:$0xff]   ;;  %v659_v25 = vld [vmem:[%s809_s30 + $0xa8] ss:$16 sps:$4 sm:$0xff]  }
  0x22   : > { %v660_v26 = vld [vmem:[%s809_s30 + $0xc4] ss:$16 sps:$4 sm:$0x3f]   ;;  %v662_v27 = vld [vmem:[%s809_s30 + $0xcc] ss:$16 sps:$4 sm:$0x3f]  }
  0x23   : > { %v664_v28 = vld [vmem:[%s809_s30 + $0xc0] ss:$16 sps:$4 sm:$0x3f]   ;;  %v665_v29 = vld [vmem:[%s809_s30 + $0xc8] ss:$16 sps:$4 sm:$0x3f]  }
  0x24   : > { %363 = vmatpush1.bf16.msra.mxu0 %v640_v12  ;;  %404 = vmatpush1.bf16.msra.mxu1 %v641_v13  ;;  %v347_v30 = vsel %vm345_vm0, %v664_v28, 0  ;;  %v353_v31 = vsel %vm345_vm0, %v665_v29, 0 }
  0x25   : > { %364 = vmatprep.subr.bf16.mxu0 %v642_v14  ;;  %405 = vmatprep.subr.bf16.mxu1 %v644_v15 }
  0x28   : > { %365 = vmatpush1.bf16.msra.mxu0 %v646_v16  ;;  %406 = vmatpush1.bf16.msra.mxu1 %v647_v17 }
  0x29   : > { %366 = vmatprep.subr.bf16.mxu0 %v648_v18  ;;  %407 = vmatprep.subr.bf16.mxu1 %v650_v19 }
  0x2c   : > { %367 = vmatpush1.bf16.msra.mxu0 %v652_v20  ;;  %408 = vmatpush1.bf16.msra.mxu1 %v653_v21 }
  0x2d   : > { %368 = vmatprep.subr.bf16.mxu0 %v654_v22  ;;  %409 = vmatprep.subr.bf16.mxu1 %v656_v23 }
  0x30   : > { %369 = vmatpush1.bf16.msra.mxu0 %v658_v24  ;;  %410 = vmatpush1.bf16.msra.mxu1 %v659_v25 }
  0x31   : > { %573 = vmatprep.subr.msk.bf16.mxu0 %vm345_vm0, %v660_v26  ;;  %575 = vmatprep.subr.msk.bf16.mxu1 %vm345_vm0, %v662_v27 }
  0x34   : > { %371 = vmatpush1.bf16.msra.mxu0 %v347_v30  ;;  %412 = vmatpush1.bf16.msra.mxu1 %v353_v31 }
  0x37   : > { %574 = vmatmul.mubr.msk.bf16.vlgmr.msra.gmra.mrb[0].mxu0 %vm341_vm1, %v170_v32  ;;  %576 = vmatmul.mubr.msk.bf16.vlgmr.msra.gmra.mrb[0].mxu1 %vm341_vm1, %v170_v32 }
  0x8f   : > { %v203_v33 = vpop.permute.xlu0 %202 }
 0x10a   : > { %v392_v34 = vpop.f32.mrb[0].mxu0  ;;  %v433_v35 = vpop.f32.mrb[0].mxu1 }
 0x10b   : > { %v393_v36 = vadd.f32 %v392_v34, %v203_v33  ;;  %v394_v37 = vpop.f32.mrb[1].mxu0  ;;  %v435_v38 = vpop.f32.mrb[1].mxu1  ;;  %v434_v45 = vadd.f32 %v433_v35, %v203_v33 }
 0x10c   : > { %v395_v39 = vadd.f32 %v394_v37, %v203_v33  ;;  %v396_v40 = vpop.f32.mrb[2].mxu0  ;;  %v437_v41 = vpop.f32.mrb[2].mxu1  ;;  %v436_v44 = vadd.f32 %v435_v38, %v203_v33 }
 0x10d   : > { %v397_v42 = vpop.f32.mrb[3].mxu0  ;;  %441 = vrot.lane.b32.xlu0 %v393_v36, %s731_s6  ;;  %v438_v43 = vpop.f32.mrb[3].mxu1 }
 0x10e   : > { %447 = vrot.lane.b32.xlu1 %v395_v39, %s731_s6 }
 0x111   : > { %459 = vrot.lane.b32.xlu0 %v436_v44, %s731_s6 }
 0x112   : > { %453 = vrot.lane.b32.xlu1 %v434_v45, %s731_s6 }
 0x17f   : > { %v442_v46 = vpop.permute.xlu0 %441 }
 0x180   : > { %v444_v47 = vmax.f32 %v393_v36, %v442_v46  ;;  %v448_v48 = vpop.permute.xlu1 %447 }
 0x182   : > { %v445_v49 = vmax.f32 %v444_v47, %v395_v39 }
 0x183   : > { %v460_v55 = vpop.permute.xlu0 %459 }
 0x184   : > { %v450_v50 = vmax.f32 %v445_v49, %v448_v48  ;;  %v454_v52 = vpop.permute.xlu1 %453 }
 0x186   : > { %v451_v51 = vmax.f32 %v450_v50, %v434_v45 }
 0x188   : > { %v456_v53 = vmax.f32 %v451_v51, %v454_v52 }
 0x18a   : > { %v457_v54 = vmax.f32 %v456_v53, %v436_v44 }
 0x18c   : > { %v462_v56 = vmax.f32 %v457_v54, %v460_v55 }
 0x18e   : > { %v463_v57 = vmax.f32 %v462_v56, 0.0 }
 0x190   : > { %465 = vst.msk [vmem:[%s163_s10] sm:$0xff] %vm464_vm2, %v463_v57 }
 0x191   : > { %679 = shalt.err (!%p676_p3)
}
 0x192   : > { %s680_s28 = scalar_lea.hbm %s847_s20, 128  ;;  %s684_s4 = scalar_lea.hbm %s892_s3, 256 }
 0x193   : > { %p681_p4 = scmp.ne.s32.totalorder %s847_s20, %s680_s28  ;;  %p685_p9 = scmp.lt.u32.totalorder %s847_s20, %s892_s3 }
 0x194   : > { %p686_p10 = scmp.lt.u32.totalorder %s684_s4, %s680_s28  ;;  %p688_p12 = scmp.lt.u32.totalorder %s680_s28, %s847_s20 }
 0x195   : > { %p682_p7 = pnand %p681_p4, %p791_p5 }
 0x196   : > { %p687_p11 = por %p686_p10, %p685_p9 }
 0x197   : > { %p683_p8 = pneg %p682_p7 }
 0x198   : > { %p689_p13 = por %p688_p12, %p687_p11 }
 0x19a   : > { %p690_p0 = pnand %p689_p13, %p683_p8 }
 0x19c   : > { %693 = shalt.err (!%p690_p0)
}
 0x19d   : > { %582 = dma.vmem_to_hbm [thread:$0]  (%p791_p5), %s849_s11, 128, %s847_s20, %s467_s24  }
 0x19e PF: > { %p588_p1 = scmp.ge.s32.totalorder %s728_s15, 2  ;;  %s492_s7 = sand.u32 1, %s716_s12  }
 0x19f   : > { %s493_s8 = scalar_lea.sflag [#allocation3], %s492_s7 }
 0x1a0   : > { %p585_p2 = pnand %p588_p1, %p795_p6 }
 0x1a2   : > { %711 = dma.done.wait (!%p585_p2), %s493_s8, 128  }
 0x1a3   : > { %713 = vsyncadd (!%p585_p2), %s493_s8, 4294967168  ;;  %p13_p3 = scmp.ge.s32.totalorder %s778_s18, 4   ;;  %s895_s12 = smov %s720_s13 }
 0x1a4   : > { %s896_s13 = smov %s724_s14  ;;  %s897_s14 = smov %s789_s21 }
 0x1a5   : > { %s898_s15 = smov %s778_s18  ;;  %15 = sbr.rel (!%p13_p3) target bundleno = 3 (0x3), region = 67 }
 0x1ac   :  { %498 = vsyncpa [#allocation3], 1 }
 0x1ad   :  { %500 = vsyncpa [#allocation3 + $0x1], 1 }

</bundles_post_ra>
